<compile_context>
chip_gen: v7x
topology: tpu7x:2x2x1
jax: 0.10.0
libtpu: 0.0.40
codegen_flags: <defaults>
</compile_context>

<pallas_src>
import jax
import jax.numpy as jnp
from jax.experimental import pallas as pl
from jax.experimental.pallas import tpu as pltpu

IN_CH = 8          # raw input channels
HIDDEN = 64        # ChebConv width
FC_HIDDEN = 256    # fc1 width
NUM_LAYERS = 8     # number of ChebConv layers
WCAT = 2 * HIDDEN  # rows of one packed [W0; W1] block


# ---------------------------- Pallas kernel ------------------------------

def _gcn_fused_kernel(idx_ref, L_ref, x_ref, w_all_ref, b_all_ref,
                      fc1_w_ref, fc_misc_ref, o_ref, y_scratch):
    """Whole GCN forward in one kernel.

    idx_ref     : (1,)   int32, SMEM   -- agent node index
    L_ref       : (N, N) f32           -- scaled Laplacian  -D^-1/2 A D^-1/2
    x_ref       : (N, 64) f32          -- zero-padded node features
    w_all_ref   : (8*128, 64) f32      -- per layer [W0; W1] stacked
    b_all_ref   : (8, 64) f32          -- per layer bias
    fc1_w_ref   : (64, 256) f32
    fc_misc_ref : (3, 256) f32         -- row0 fc1_b, row1 fc2_w^T, row2[0] fc2_b
    o_ref       : (1, 1) f32 output
    y_scratch   : (N, 64) f32 VMEM scratch (agent-row gather)
    """
    L = L_ref[...]                                   # (N, N)
    y = x_ref[...]                                   # (N, 64)

    # 8 x ChebConv(K=2) + ReLU, fully unrolled; static slices of the packed
    # weight slab, two MXU pushes + VPU add per layer, no VMEM round-trips.
    for l in range(NUM_LAYERS):
        tx1 = jnp.dot(L, y, preferred_element_type=jnp.float32)       # (N, 64)
        base = l * WCAT
        w0 = w_all_ref[base:base + HIDDEN, :]                          # (64, 64)
        w1 = w_all_ref[base + HIDDEN:base + WCAT, :]                   # (64, 64)
        y = jnp.maximum(
            jnp.dot(y, w0, preferred_element_type=jnp.float32)
            + jnp.dot(tx1, w1, preferred_element_type=jnp.float32)
            + b_all_ref[l:l + 1, :],
            0.0)                                                       # (N, 64)

    # Agent-node gather: dump final activation, dynamic sublane row read.
    y_scratch[...] = y
    agent = idx_ref[0]
    h = y_scratch[pl.ds(agent, 1), :]                                  # (1, 64)

    # fc1 + ReLU on the MXU.
    h = jnp.maximum(
        jnp.dot(h, fc1_w_ref[...], preferred_element_type=jnp.float32)
        + fc_misc_ref[0:1, :], 0.0)                                    # (1, 256)

    # fc2 as a VPU multiply + lane reduction (avoids a 1-row MXU matmul).
    o_ref[...] = (jnp.sum(h * fc_misc_ref[1:2, :], axis=1, keepdims=True)
                  + fc_misc_ref[2:3, 0:1])                             # (1, 1)


# ------------------------------ wrapper ----------------------------------

def _fused_forward_call(agent_idx, L_hat, x_pad, w_all, b_all, fc1_w, fc_misc):
    n = x_pad.shape[0]
    return pl.pallas_call(
        _gcn_fused_kernel,
        out_shape=jax.ShapeDtypeStruct((1, 1), jnp.float32),
        in_specs=([pl.BlockSpec(memory_space=pltpu.MemorySpace.SMEM)]
                  + [pl.BlockSpec(memory_space=pltpu.MemorySpace.VMEM)] * 6),
        out_specs=pl.BlockSpec(memory_space=pltpu.MemorySpace.VMEM),
        scratch_shapes=[pltpu.VMEM((n, HIDDEN), jnp.float32)],
    )(agent_idx, L_hat, x_pad, w_all, b_all, fc1_w, fc_misc)


# --------------------------- plain-JAX glue ------------------------------

def build_scaled_laplacian(edges, num_nodes):
    """Dense equivalent of ChebConv.__norm__ (sym norm, lambda_max=2)."""
    src, dst = edges[0], edges[1]
    w = (src != dst).astype(jnp.float32)                 # drop self loops
    A = jnp.zeros((num_nodes, num_nodes), jnp.float32).at[src, dst].add(w)
    deg = A.sum(axis=1)
    d_inv_sqrt = jnp.where(deg > 0.0,
                           1.0 / jnp.sqrt(jnp.where(deg > 0.0, deg, 1.0)),
                           0.0)
    return -(d_inv_sqrt[:, None] * A) * d_inv_sqrt[None, :]


def agent_index(x):
    """featuresAtAgentNode: last i with x[i,3]==1, else -1 (python wrap)."""
    n = x.shape[0]
    idx = jnp.arange(n)
    agent = jnp.max(jnp.where(x[:, 3] == 1.0, idx, -1))
    agent = jnp.where(agent < 0, agent + n, agent)       # y[-1] behaviour
    return agent.astype(jnp.int32).reshape((1,))


def init_params(key):
    def glorot(k, shape):
        bound = jnp.sqrt(6.0 / (shape[0] + shape[1]))
        return jax.random.uniform(k, shape, jnp.float32, -bound, bound)

    def linear_uniform(k, shape, fan_in):
        bound = 1.0 / jnp.sqrt(jnp.float32(fan_in))
        return jax.random.uniform(k, shape, jnp.float32, -bound, bound)

    keys = jax.random.split(key, 3 * NUM_LAYERS + 4)
    cheb = []
    c_in = IN_CH
    for layer in range(NUM_LAYERS):
        k0, k1, kb = keys[3 * layer], keys[3 * layer + 1], keys[3 * layer + 2]
        # torch_geometric init is zeros for bias; use small random values here
        # so the bias path in the fused kernel is actually exercised.
        cheb.append((glorot(k0, (c_in, HIDDEN)),                       # W for T0
                     glorot(k1, (c_in, HIDDEN)),                       # W for T1
                     0.05 * jax.random.normal(kb, (1, HIDDEN), jnp.float32)))
        c_in = HIDDEN
    kf1w, kf1b, kf2w, kf2b = keys[3 * NUM_LAYERS:]
    fc1 = (linear_uniform(kf1w, (HIDDEN, FC_HIDDEN), HIDDEN),
           linear_uniform(kf1b, (1, FC_HIDDEN), HIDDEN))
    fc2 = (linear_uniform(kf2w, (FC_HIDDEN, 1), FC_HIDDEN),
           linear_uniform(kf2b, (1, 1), FC_HIDDEN))
    return {"cheb": cheb, "fc1": fc1, "fc2": fc2}


def prepare_params(params):
    """One-time packing of weights for the fused kernel (hoisted out of the
    per-call path): zero-pad layer-1 to 64 channels, stack [W0;W1] per layer
    into one (8*128, 64) slab, biases into (8, 64), fc misc into (3, 256)."""
    wcats, biases = [], []
    for (w0, w1, b) in params["cheb"]:
        c_in = w0.shape[0]
        if c_in < HIDDEN:
            pad = ((0, HIDDEN - c_in), (0, 0))
            w0 = jnp.pad(w0, pad)
            w1 = jnp.pad(w1, pad)
        wcats.append(jnp.concatenate([w0, w1], axis=0))   # (128, 64)
        biases.append(b)                                  # (1, 64)
    w_all = jnp.concatenate(wcats, axis=0)                # (1024, 64)
    b_all = jnp.concatenate(biases, axis=0)               # (8, 64)
    fc1_w, fc1_b = params["fc1"]                          # (64,256), (1,256)
    fc2_w, fc2_b = params["fc2"]                          # (256,1), (1,1)
    fc2_row = fc2_w.T                                     # (1,256)
    fc2_b_row = jnp.zeros((1, FC_HIDDEN), jnp.float32).at[0, 0].set(fc2_b[0, 0])
    fc_misc = jnp.concatenate([fc1_b, fc2_row, fc2_b_row], axis=0)   # (3, 256)
    return {"w_all": w_all, "b_all": b_all, "fc1_w": fc1_w, "fc_misc": fc_misc}


def gcn_forward(prepared, x, edges):
    n = x.shape[0]
    L_hat = build_scaled_laplacian(edges, n)
    agent_idx = agent_index(x)
    x_pad = jnp.pad(x, ((0, 0), (0, HIDDEN - x.shape[1])))   # 8 -> 64 channels
    out = _fused_forward_call(agent_idx, L_hat, x_pad,
                              prepared["w_all"], prepared["b_all"],
                              prepared["fc1_w"], prepared["fc_misc"])
    # torch: fc2 applied to a 1-D [64] vector yields a 1-D [1] output.
    return out.reshape((1,))


def gcn_reference(params, x, edges):
    """Pure-JAX reference (same math, un-fused) for a sanity check."""
    n = x.shape[0]
    L_hat = build_scaled_laplacian(edges, n)
    y = x
    for (w0, w1, b) in params["cheb"]:
        y = jnp.maximum(y @ w0 + (L_hat @ y) @ w1 + b, 0.0)
    idx = jnp.arange(n)
    agent = jnp.max(jnp.where(x[:, 3] == 1.0, idx, -1))
    agent = jnp.where(agent < 0, agent + n, agent)
    h = y[agent]
    h = jnp.maximum(h @ params["fc1"][0] + params["fc1"][1][0], 0.0)
    return h @ params["fc2"][0] + params["fc2"][1][0]


# -------------------------------- main -----------------------------------

if __name__ == "__main__":
    key = jax.random.PRNGKey(0)
    k_x, k_p = jax.random.split(key)

    N = 16                                      # number of graph nodes
    x = jax.random.normal(k_x, (N, IN_CH), jnp.float32)
    # mark node 5 as the agent node (column 3 == 1), as the module expects
    x = x.at[:, 3].set(0.0)
    x = x.at[5, 3].set(1.0)

    # ring graph, both directions: edge_index of shape [2, 2N]
    src = jnp.arange(N, dtype=jnp.int32)
    dst = (src + 1) % N
    edges = jnp.stack([jnp.concatenate([src, dst]),
                       jnp.concatenate([dst, src])], axis=0)

    params = init_params(k_p)
    prepared = jax.tree_util.tree_map(jax.block_until_ready,
                                      prepare_params(params))  # one-time packing

    out = jax.jit(gcn_forward)(prepared, x, edges)
    out = jax.block_until_ready(out)
    assert out.shape == (1,) and out.dtype == jnp.float32

    ref = gcn_reference(params, x, edges)
    assert jnp.allclose(out, ref, rtol=2e-3, atol=1e-3), (out, ref)

    print("KERNEL_OK")
</pallas_src>

<mosaic_0001>
module attributes {stable_mosaic.version = 11 : i64} {
  func.func private @main(%arg0: i32) attributes {dimension_semantics = [#tpu.dimension_semantics<core_parallel>], iteration_bounds = array<i64: 2>, tpu.core_type = #tpu.core_type<sc_scalar_subcore>, window_params = []} {
    return
  }
}

module attributes {stable_mosaic.version = 11 : i64} {
  func.func private @main(%arg0: i32) attributes {dimension_semantics = [#tpu.dimension_semantics<core_parallel>], iteration_bounds = array<i64: 2>, tpu.core_type = #tpu.core_type<sc_scalar_subcore>, window_params = []} {
    return
  }
}

module attributes {stable_mosaic.version = 11 : i64} {
  func.func @_gcn_fused_kernel(%arg0: memref<1xi32, #tpu.memory_space<smem>>, %arg1: memref<16x16xf32, #tpu.memory_space<vmem>>, %arg2: memref<16x64xf32, #tpu.memory_space<vmem>>, %arg3: memref<1024x64xf32, #tpu.memory_space<vmem>>, %arg4: memref<8x64xf32, #tpu.memory_space<vmem>>, %arg5: memref<64x256xf32, #tpu.memory_space<vmem>>, %arg6: memref<3x256xf32, #tpu.memory_space<vmem>>, %arg7: memref<1x1xf32, #tpu.memory_space<vmem>>, %arg8: memref<16x64xf32, #tpu.memory_space<vmem>>) attributes {dimension_semantics = [], scalar_prefetch = 0 : i64, scratch_operands = 1 : i64, tpu.core_type = #tpu.core_type<tc>} {
    %c0 = arith.constant 0 : index
    %c0_0 = arith.constant 0 : index
    %0 = vector.load %arg1[%c0, %c0_0] : memref<16x16xf32, #tpu.memory_space<vmem>>, vector<16x16xf32>
    %c0_1 = arith.constant 0 : index
    %c0_2 = arith.constant 0 : index
    %1 = vector.load %arg2[%c0_1, %c0_2] : memref<16x64xf32, #tpu.memory_space<vmem>>, vector<16x64xf32>
    %cst = arith.constant dense<0.000000e+00> : vector<16x64xf32>
    %2 = tpu.matmul %0, %1, %cst {dimension_numbers = #tpu.dot_dimension_numbers<[1], [0], [0], [1], [0, 0, 1, 1], [], []>} : vector<16x16xf32>, vector<16x64xf32>, vector<16x64xf32> -> vector<16x64xf32>
    %c0_3 = arith.constant 0 : index
    %c0_4 = arith.constant 0 : index
    %3 = vector.load %arg3[%c0_3, %c0_4] : memref<1024x64xf32, #tpu.memory_space<vmem>>, vector<64x64xf32>
    %c64 = arith.constant 64 : index
    %c0_5 = arith.constant 0 : index
    %4 = vector.load %arg3[%c64, %c0_5] : memref<1024x64xf32, #tpu.memory_space<vmem>>, vector<64x64xf32>
    %cst_6 = arith.constant dense<0.000000e+00> : vector<16x64xf32>
    %5 = tpu.matmul %1, %3, %cst_6 {dimension_numbers = #tpu.dot_dimension_numbers<[1], [0], [0], [1], [0, 0, 1, 1], [], []>} : vector<16x64xf32>, vector<64x64xf32>, vector<16x64xf32> -> vector<16x64xf32>
    %cst_7 = arith.constant dense<0.000000e+00> : vector<16x64xf32>
    %6 = tpu.matmul %2, %4, %cst_7 {dimension_numbers = #tpu.dot_dimension_numbers<[1], [0], [0], [1], [0, 0, 1, 1], [], []>} : vector<16x64xf32>, vector<64x64xf32>, vector<16x64xf32> -> vector<16x64xf32>
    %7 = arith.addf %5, %6 : vector<16x64xf32>
    %c0_8 = arith.constant 0 : index
    %c0_9 = arith.constant 0 : index
    %8 = vector.load %arg4[%c0_8, %c0_9] : memref<8x64xf32, #tpu.memory_space<vmem>>, vector<1x64xf32>
    %9 = vector.broadcast %8 : vector<1x64xf32> to vector<16x64xf32>
    %10 = arith.addf %7, %9 : vector<16x64xf32>
    %cst_10 = arith.constant 0.000000e+00 : f32
    %11 = vector.broadcast %cst_10 : f32 to vector<16x64xf32>
    %12 = arith.maximumf %10, %11 : vector<16x64xf32>
    %cst_11 = arith.constant dense<0.000000e+00> : vector<16x64xf32>
    %13 = tpu.matmul %0, %12, %cst_11 {dimension_numbers = #tpu.dot_dimension_numbers<[1], [0], [0], [1], [0, 0, 1, 1], [], []>} : vector<16x16xf32>, vector<16x64xf32>, vector<16x64xf32> -> vector<16x64xf32>
    %c128 = arith.constant 128 : index
    %c0_12 = arith.constant 0 : index
    %14 = vector.load %arg3[%c128, %c0_12] : memref<1024x64xf32, #tpu.memory_space<vmem>>, vector<64x64xf32>
    %c192 = arith.constant 192 : index
    %c0_13 = arith.constant 0 : index
    %15 = vector.load %arg3[%c192, %c0_13] : memref<1024x64xf32, #tpu.memory_space<vmem>>, vector<64x64xf32>
    %cst_14 = arith.constant dense<0.000000e+00> : vector<16x64xf32>
    %16 = tpu.matmul %12, %14, %cst_14 {dimension_numbers = #tpu.dot_dimension_numbers<[1], [0], [0], [1], [0, 0, 1, 1], [], []>} : vector<16x64xf32>, vector<64x64xf32>, vector<16x64xf32> -> vector<16x64xf32>
    %cst_15 = arith.constant dense<0.000000e+00> : vector<16x64xf32>
    %17 = tpu.matmul %13, %15, %cst_15 {dimension_numbers = #tpu.dot_dimension_numbers<[1], [0], [0], [1], [0, 0, 1, 1], [], []>} : vector<16x64xf32>, vector<64x64xf32>, vector<16x64xf32> -> vector<16x64xf32>
    %18 = arith.addf %16, %17 : vector<16x64xf32>
    %c1 = arith.constant 1 : index
    %c0_16 = arith.constant 0 : index
    %19 = vector.load %arg4[%c1, %c0_16] : memref<8x64xf32, #tpu.memory_space<vmem>>, vector<1x64xf32>
    %20 = vector.broadcast %19 : vector<1x64xf32> to vector<16x64xf32>
    %21 = arith.addf %18, %20 : vector<16x64xf32>
    %cst_17 = arith.constant 0.000000e+00 : f32
    %22 = vector.broadcast %cst_17 : f32 to vector<16x64xf32>
    %23 = arith.maximumf %21, %22 : vector<16x64xf32>
    %cst_18 = arith.constant dense<0.000000e+00> : vector<16x64xf32>
    %24 = tpu.matmul %0, %23, %cst_18 {dimension_numbers = #tpu.dot_dimension_numbers<[1], [0], [0], [1], [0, 0, 1, 1], [], []>} : vector<16x16xf32>, vector<16x64xf32>, vector<16x64xf32> -> vector<16x64xf32>
    %c256 = arith.constant 256 : index
    %c0_19 = arith.constant 0 : index
    %25 = vector.load %arg3[%c256, %c0_19] : memref<1024x64xf32, #tpu.memory_space<vmem>>, vector<64x64xf32>
    %c320 = arith.constant 320 : index
    %c0_20 = arith.constant 0 : index
    %26 = vector.load %arg3[%c320, %c0_20] : memref<1024x64xf32, #tpu.memory_space<vmem>>, vector<64x64xf32>
    %cst_21 = arith.constant dense<0.000000e+00> : vector<16x64xf32>
    %27 = tpu.matmul %23, %25, %cst_21 {dimension_numbers = #tpu.dot_dimension_numbers<[1], [0], [0], [1], [0, 0, 1, 1], [], []>} : vector<16x64xf32>, vector<64x64xf32>, vector<16x64xf32> -> vector<16x64xf32>
    %cst_22 = arith.constant dense<0.000000e+00> : vector<16x64xf32>
    %28 = tpu.matmul %24, %26, %cst_22 {dimension_numbers = #tpu.dot_dimension_numbers<[1], [0], [0], [1], [0, 0, 1, 1], [], []>} : vector<16x64xf32>, vector<64x64xf32>, vector<16x64xf32> -> vector<16x64xf32>
    %29 = arith.addf %27, %28 : vector<16x64xf32>
    %c2 = arith.constant 2 : index
    %c0_23 = arith.constant 0 : index
    %30 = vector.load %arg4[%c2, %c0_23] : memref<8x64xf32, #tpu.memory_space<vmem>>, vector<1x64xf32>
    %31 = vector.broadcast %30 : vector<1x64xf32> to vector<16x64xf32>
    %32 = arith.addf %29, %31 : vector<16x64xf32>
    %cst_24 = arith.constant 0.000000e+00 : f32
    %33 = vector.broadcast %cst_24 : f32 to vector<16x64xf32>
    %34 = arith.maximumf %32, %33 : vector<16x64xf32>
    %cst_25 = arith.constant dense<0.000000e+00> : vector<16x64xf32>
    %35 = tpu.matmul %0, %34, %cst_25 {dimension_numbers = #tpu.dot_dimension_numbers<[1], [0], [0], [1], [0, 0, 1, 1], [], []>} : vector<16x16xf32>, vector<16x64xf32>, vector<16x64xf32> -> vector<16x64xf32>
    %c384 = arith.constant 384 : index
    %c0_26 = arith.constant 0 : index
    %36 = vector.load %arg3[%c384, %c0_26] : memref<1024x64xf32, #tpu.memory_space<vmem>>, vector<64x64xf32>
    %c448 = arith.constant 448 : index
    %c0_27 = arith.constant 0 : index
    %37 = vector.load %arg3[%c448, %c0_27] : memref<1024x64xf32, #tpu.memory_space<vmem>>, vector<64x64xf32>
    %cst_28 = arith.constant dense<0.000000e+00> : vector<16x64xf32>
    %38 = tpu.matmul %34, %36, %cst_28 {dimension_numbers = #tpu.dot_dimension_numbers<[1], [0], [0], [1], [0, 0, 1, 1], [], []>} : vector<16x64xf32>, vector<64x64xf32>, vector<16x64xf32> -> vector<16x64xf32>
    %cst_29 = arith.constant dense<0.000000e+00> : vector<16x64xf32>
    %39 = tpu.matmul %35, %37, %cst_29 {dimension_numbers = #tpu.dot_dimension_numbers<[1], [0], [0], [1], [0, 0, 1, 1], [], []>} : vector<16x64xf32>, vector<64x64xf32>, vector<16x64xf32> -> vector<16x64xf32>
    %40 = arith.addf %38, %39 : vector<16x64xf32>
    %c3 = arith.constant 3 : index
    %c0_30 = arith.constant 0 : index
    %41 = vector.load %arg4[%c3, %c0_30] : memref<8x64xf32, #tpu.memory_space<vmem>>, vector<1x64xf32>
    %42 = vector.broadcast %41 : vector<1x64xf32> to vector<16x64xf32>
    %43 = arith.addf %40, %42 : vector<16x64xf32>
    %cst_31 = arith.constant 0.000000e+00 : f32
    %44 = vector.broadcast %cst_31 : f32 to vector<16x64xf32>
    %45 = arith.maximumf %43, %44 : vector<16x64xf32>
    %cst_32 = arith.constant dense<0.000000e+00> : vector<16x64xf32>
    %46 = tpu.matmul %0, %45, %cst_32 {dimension_numbers = #tpu.dot_dimension_numbers<[1], [0], [0], [1], [0, 0, 1, 1], [], []>} : vector<16x16xf32>, vector<16x64xf32>, vector<16x64xf32> -> vector<16x64xf32>
    %c512 = arith.constant 512 : index
    %c0_33 = arith.constant 0 : index
    %47 = vector.load %arg3[%c512, %c0_33] : memref<1024x64xf32, #tpu.memory_space<vmem>>, vector<64x64xf32>
    %c576 = arith.constant 576 : index
    %c0_34 = arith.constant 0 : index
    %48 = vector.load %arg3[%c576, %c0_34] : memref<1024x64xf32, #tpu.memory_space<vmem>>, vector<64x64xf32>
    %cst_35 = arith.constant dense<0.000000e+00> : vector<16x64xf32>
    %49 = tpu.matmul %45, %47, %cst_35 {dimension_numbers = #tpu.dot_dimension_numbers<[1], [0], [0], [1], [0, 0, 1, 1], [], []>} : vector<16x64xf32>, vector<64x64xf32>, vector<16x64xf32> -> vector<16x64xf32>
    %cst_36 = arith.constant dense<0.000000e+00> : vector<16x64xf32>
    %50 = tpu.matmul %46, %48, %cst_36 {dimension_numbers = #tpu.dot_dimension_numbers<[1], [0], [0], [1], [0, 0, 1, 1], [], []>} : vector<16x64xf32>, vector<64x64xf32>, vector<16x64xf32> -> vector<16x64xf32>
    %51 = arith.addf %49, %50 : vector<16x64xf32>
    %c4 = arith.constant 4 : index
    %c0_37 = arith.constant 0 : index
    %52 = vector.load %arg4[%c4, %c0_37] : memref<8x64xf32, #tpu.memory_space<vmem>>, vector<1x64xf32>
    %53 = vector.broadcast %52 : vector<1x64xf32> to vector<16x64xf32>
    %54 = arith.addf %51, %53 : vector<16x64xf32>
    %cst_38 = arith.constant 0.000000e+00 : f32
    %55 = vector.broadcast %cst_38 : f32 to vector<16x64xf32>
    %56 = arith.maximumf %54, %55 : vector<16x64xf32>
    %cst_39 = arith.constant dense<0.000000e+00> : vector<16x64xf32>
    %57 = tpu.matmul %0, %56, %cst_39 {dimension_numbers = #tpu.dot_dimension_numbers<[1], [0], [0], [1], [0, 0, 1, 1], [], []>} : vector<16x16xf32>, vector<16x64xf32>, vector<16x64xf32> -> vector<16x64xf32>
    %c640 = arith.constant 640 : index
    %c0_40 = arith.constant 0 : index
    %58 = vector.load %arg3[%c640, %c0_40] : memref<1024x64xf32, #tpu.memory_space<vmem>>, vector<64x64xf32>
    %c704 = arith.constant 704 : index
    %c0_41 = arith.constant 0 : index
    %59 = vector.load %arg3[%c704, %c0_41] : memref<1024x64xf32, #tpu.memory_space<vmem>>, vector<64x64xf32>
    %cst_42 = arith.constant dense<0.000000e+00> : vector<16x64xf32>
    %60 = tpu.matmul %56, %58, %cst_42 {dimension_numbers = #tpu.dot_dimension_numbers<[1], [0], [0], [1], [0, 0, 1, 1], [], []>} : vector<16x64xf32>, vector<64x64xf32>, vector<16x64xf32> -> vector<16x64xf32>
    %cst_43 = arith.constant dense<0.000000e+00> : vector<16x64xf32>
    %61 = tpu.matmul %57, %59, %cst_43 {dimension_numbers = #tpu.dot_dimension_numbers<[1], [0], [0], [1], [0, 0, 1, 1], [], []>} : vector<16x64xf32>, vector<64x64xf32>, vector<16x64xf32> -> vector<16x64xf32>
    %62 = arith.addf %60, %61 : vector<16x64xf32>
    %c5 = arith.constant 5 : index
    %c0_44 = arith.constant 0 : index
    %63 = vector.load %arg4[%c5, %c0_44] : memref<8x64xf32, #tpu.memory_space<vmem>>, vector<1x64xf32>
    %64 = vector.broadcast %63 : vector<1x64xf32> to vector<16x64xf32>
    %65 = arith.addf %62, %64 : vector<16x64xf32>
    %cst_45 = arith.constant 0.000000e+00 : f32
    %66 = vector.broadcast %cst_45 : f32 to vector<16x64xf32>
    %67 = arith.maximumf %65, %66 : vector<16x64xf32>
    %cst_46 = arith.constant dense<0.000000e+00> : vector<16x64xf32>
    %68 = tpu.matmul %0, %67, %cst_46 {dimension_numbers = #tpu.dot_dimension_numbers<[1], [0], [0], [1], [0, 0, 1, 1], [], []>} : vector<16x16xf32>, vector<16x64xf32>, vector<16x64xf32> -> vector<16x64xf32>
    %c768 = arith.constant 768 : index
    %c0_47 = arith.constant 0 : index
    %69 = vector.load %arg3[%c768, %c0_47] : memref<1024x64xf32, #tpu.memory_space<vmem>>, vector<64x64xf32>
    %c832 = arith.constant 832 : index
    %c0_48 = arith.constant 0 : index
    %70 = vector.load %arg3[%c832, %c0_48] : memref<1024x64xf32, #tpu.memory_space<vmem>>, vector<64x64xf32>
    %cst_49 = arith.constant dense<0.000000e+00> : vector<16x64xf32>
    %71 = tpu.matmul %67, %69, %cst_49 {dimension_numbers = #tpu.dot_dimension_numbers<[1], [0], [0], [1], [0, 0, 1, 1], [], []>} : vector<16x64xf32>, vector<64x64xf32>, vector<16x64xf32> -> vector<16x64xf32>
    %cst_50 = arith.constant dense<0.000000e+00> : vector<16x64xf32>
    %72 = tpu.matmul %68, %70, %cst_50 {dimension_numbers = #tpu.dot_dimension_numbers<[1], [0], [0], [1], [0, 0, 1, 1], [], []>} : vector<16x64xf32>, vector<64x64xf32>, vector<16x64xf32> -> vector<16x64xf32>
    %73 = arith.addf %71, %72 : vector<16x64xf32>
    %c6 = arith.constant 6 : index
    %c0_51 = arith.constant 0 : index
    %74 = vector.load %arg4[%c6, %c0_51] : memref<8x64xf32, #tpu.memory_space<vmem>>, vector<1x64xf32>
    %75 = vector.broadcast %74 : vector<1x64xf32> to vector<16x64xf32>
    %76 = arith.addf %73, %75 : vector<16x64xf32>
    %cst_52 = arith.constant 0.000000e+00 : f32
    %77 = vector.broadcast %cst_52 : f32 to vector<16x64xf32>
    %78 = arith.maximumf %76, %77 : vector<16x64xf32>
    %cst_53 = arith.constant dense<0.000000e+00> : vector<16x64xf32>
    %79 = tpu.matmul %0, %78, %cst_53 {dimension_numbers = #tpu.dot_dimension_numbers<[1], [0], [0], [1], [0, 0, 1, 1], [], []>} : vector<16x16xf32>, vector<16x64xf32>, vector<16x64xf32> -> vector<16x64xf32>
    %c896 = arith.constant 896 : index
    %c0_54 = arith.constant 0 : index
    %80 = vector.load %arg3[%c896, %c0_54] : memref<1024x64xf32, #tpu.memory_space<vmem>>, vector<64x64xf32>
    %c960 = arith.constant 960 : index
    %c0_55 = arith.constant 0 : index
    %81 = vector.load %arg3[%c960, %c0_55] : memref<1024x64xf32, #tpu.memory_space<vmem>>, vector<64x64xf32>
    %cst_56 = arith.constant dense<0.000000e+00> : vector<16x64xf32>
    %82 = tpu.matmul %78, %80, %cst_56 {dimension_numbers = #tpu.dot_dimension_numbers<[1], [0], [0], [1], [0, 0, 1, 1], [], []>} : vector<16x64xf32>, vector<64x64xf32>, vector<16x64xf32> -> vector<16x64xf32>
    %cst_57 = arith.constant dense<0.000000e+00> : vector<16x64xf32>
    %83 = tpu.matmul %79, %81, %cst_57 {dimension_numbers = #tpu.dot_dimension_numbers<[1], [0], [0], [1], [0, 0, 1, 1], [], []>} : vector<16x64xf32>, vector<64x64xf32>, vector<16x64xf32> -> vector<16x64xf32>
    %84 = arith.addf %82, %83 : vector<16x64xf32>
    %c7 = arith.constant 7 : index
    %c0_58 = arith.constant 0 : index
    %85 = vector.load %arg4[%c7, %c0_58] : memref<8x64xf32, #tpu.memory_space<vmem>>, vector<1x64xf32>
    %86 = vector.broadcast %85 : vector<1x64xf32> to vector<16x64xf32>
    %87 = arith.addf %84, %86 : vector<16x64xf32>
    %cst_59 = arith.constant 0.000000e+00 : f32
    %88 = vector.broadcast %cst_59 : f32 to vector<16x64xf32>
    %89 = arith.maximumf %87, %88 : vector<16x64xf32>
    %c0_60 = arith.constant 0 : index
    %c0_61 = arith.constant 0 : index
    %90 = vector.load %arg8[%c0_60, %c0_61] : memref<16x64xf32, #tpu.memory_space<vmem>>, vector<16x64xf32>
    tpu.vector_store %arg8[%c0_60, %c0_61], %89 {strides = array<i32>} : memref<16x64xf32, #tpu.memory_space<vmem>>, vector<16x64xf32>,
    %c0_62 = arith.constant 0 : index
    %91 = memref.load %arg0[%c0_62] : memref<1xi32, #tpu.memory_space<smem>>
    %92 = arith.index_cast %91 : i32 to index
    %c0_63 = arith.constant 0 : index
    %93 = vector.load %arg8[%92, %c0_63] : memref<16x64xf32, #tpu.memory_space<vmem>>, vector<1x64xf32>
    %c0_64 = arith.constant 0 : index
    %c0_65 = arith.constant 0 : index
    %94 = vector.load %arg5[%c0_64, %c0_65] : memref<64x256xf32, #tpu.memory_space<vmem>>, vector<64x256xf32>
    %cst_66 = arith.constant dense<0.000000e+00> : vector<1x256xf32>
    %95 = tpu.matmul %93, %94, %cst_66 {dimension_numbers = #tpu.dot_dimension_numbers<[1], [0], [0], [1], [0, 0, 1, 1], [], []>} : vector<1x64xf32>, vector<64x256xf32>, vector<1x256xf32> -> vector<1x256xf32>
    %c0_67 = arith.constant 0 : index
    %c0_68 = arith.constant 0 : index
    %96 = vector.load %arg6[%c0_67, %c0_68] : memref<3x256xf32, #tpu.memory_space<vmem>>, vector<1x256xf32>
    %97 = arith.addf %95, %96 : vector<1x256xf32>
    %cst_69 = arith.constant 0.000000e+00 : f32
    %98 = vector.broadcast %cst_69 : f32 to vector<1x256xf32>
    %99 = arith.maximumf %97, %98 : vector<1x256xf32>
    %c1_70 = arith.constant 1 : index
    %c0_71 = arith.constant 0 : index
    %100 = vector.load %arg6[%c1_70, %c0_71] : memref<3x256xf32, #tpu.memory_space<vmem>>, vector<1x256xf32>
    %101 = arith.mulf %99, %100 : vector<1x256xf32>
    %cst_72 = arith.constant dense<0.000000e+00> : vector<1xf32>
    %102 = vector.multi_reduction <add>, %101, %cst_72 [1] : vector<1x256xf32> to vector<1xf32>
    %103 = vector.shape_cast %102 : vector<1xf32> to vector<1x1xf32>
    %c2_73 = arith.constant 2 : index
    %c0_74 = arith.constant 0 : index
    %104 = vector.load %arg6[%c2_73, %c0_74] : memref<3x256xf32, #tpu.memory_space<vmem>>, vector<1x1xf32>
    %105 = arith.addf %103, %104 : vector<1x1xf32>
    %c0_75 = arith.constant 0 : index
    %c0_76 = arith.constant 0 : index
    %106 = vector.load %arg7[%c0_75, %c0_76] : memref<1x1xf32, #tpu.memory_space<vmem>>, vector<1x1xf32>
    tpu.vector_store %arg7[%c0_75, %c0_76], %105 {strides = array<i32>} : memref<1x1xf32, #tpu.memory_space<vmem>>, vector<1x1xf32>,
    return
  }
}

</mosaic_0001>

<bundles_post_ra>
// kernel: gcn_forward.1
= control target key start
LH: loop header
LB: loop body
LE: loop exit
PB: predicated region body
PF: predicated region fallthrough
CT: control target
= control target key end

     0   :  { %vm32_vm0 = vcmask 130048   ;;  %s3849_s0 = inlined_call_operand.<no memory space> [shape: s32[1], index: 0, kind: input, shape index: {}]   ;;  %s3850_s1 = inlined_call_operand.vmem [shape: f32[16,16], index: 1, kind: input, shape index: {}]   ;;  %s3851_s2 = inlined_call_operand.vmem [shape: f32[16,64], index: 2, kind: input, shape index: {}]   ;;  %s3852_s3 = inlined_call_operand.vmem [shape: f32[1024,64], index: 3, kind: input, shape index: {}]   ;;  %s3853_s4 = inlined_call_operand.vmem [shape: f32[8,64], index: 4, kind: input, shape index: {}]   ;;  %s3854_s5 = inlined_call_operand.vmem [shape: f32[64,256], index: 5, kind: input, shape index: {}]   ;;  %s3855_s6 = inlined_call_operand.vmem [shape: f32[3,256], index: 6, kind: input, shape index: {}]   ;;  %s3856_s7 = inlined_call_operand.hbm [shape: f32[1,1], index: 7, kind: output, shape index: {}]  }
   0x1   :  { %v30_v0 = vld [vmem:[%s3851_s2] sm:$0xff]  ;;  %v31_v1 = vld [vmem:[%s3851_s2 + $0x8] sm:$0xff]  ;;  %v124_v7 = vld [vmem:[%s3852_s3 + $0x50] sm:$0xff] }
   0x2   :  { %v3292_v2 = vld [vmem:[%s3850_s1] sm:$0xff]  ;;  %v2895_v3 = vpack.c.bf16 %v31_v1, %v30_v0  ;;  %v123_v5 = vld [vmem:[%s3852_s3 + $0x48] sm:$0xff]  ;;  %v125_v8 = vld [vmem:[%s3852_s3 + $0x58] sm:$0xff] }
   0x3   :  { %2539 = vmatprep.mubr.msk.f32.mxu0 %vm32_vm0, %v3292_v2  ;;  %v122_v4 = vld [vmem:[%s3852_s3 + $0x40] sm:$0xff]  ;;  %v2903_v9 = vpack.c.bf16 %v125_v8, %v124_v7  ;;  %v127_v11 = vld [vmem:[%s3852_s3 + $0x68] sm:$0xff] }
   0x4   :  { %v2899_v6 = vpack.c.bf16 %v123_v5, %v122_v4  ;;  %2896 = vmatprep.subr.bf16.mxu0 %v2895_v3  ;;  %v126_v10 = vld [vmem:[%s3852_s3 + $0x60] sm:$0xff]  ;;  %v3317_v12 = vld [vmem:[%s3850_s1 + $0x8] sm:$0xff] }
   0x5   :  { %2898 = vmatpush3.bf16.msra.mxu0 %v2895_v3 }
   0x6   :  { %2900 = vmatprep.subr.bf16.mxu1 %v2899_v6 }
   0x7   :  { %13 = vsyncpa [#allocation5], 0  ;;  %2902 = vmatpush3.bf16.msra.mxu1 %v2899_v6  ;;  %v2907_v13 = vpack.c.bf16 %v127_v11, %v126_v10  ;;  %v128_v14 = vld [vmem:[%s3852_s3 + $0x70] sm:$0xff]  ;;  %v129_v15 = vld [vmem:[%s3852_s3 + $0x78] sm:$0xff]  ;;  %vm130_vm1 = vcmask 523264   ;;  %s2139_s12 = scalar_lea.vmem [#allocation2], %s3849_s0 }
   0x8   :  { %2904 = vmatprep.subr.bf16.mxu1 %v2903_v9  ;;  %2540 = vmatmul.mubr.msk.f32.vlgmr.msra.gmra.mrb[0].mxu0 %vm32_vm0, %v3317_v12  ;;  %v2911_v16 = vpack.c.bf16 %v129_v15, %v128_v14  ;;  %v114_v17 = vld [vmem:[%s3852_s3] sm:$0xff]  ;;  %v115_v18 = vld [vmem:[%s3852_s3 + $0x8] sm:$0xff]  ;;  %v116_v20 = vld [vmem:[%s3852_s3 + $0x10] sm:$0xff]  ;;  %vm2260_vm2 = vcmask 1040384   ;;  %vm2268_vm3 = vcmask 0  }
   0x9   :  { %2584 = vmatprep.mubr.msk.f32.mxu0 %vm32_vm0, %v3292_v2  ;;  %v2915_v19 = vpack.c.bf16 %v115_v18, %v114_v17  ;;  %v117_v21 = vld [vmem:[%s3852_s3 + $0x18] sm:$0xff]  ;;  %v118_v25 = vld [vmem:[%s3852_s3 + $0x20] sm:$0xff]  ;;  %v119_v26 = vld [vmem:[%s3852_s3 + $0x28] sm:$0xff] }
   0xa   :  { %v2919_v24 = vpack.c.bf16 %v117_v21, %v116_v20  ;;  %v2923_v27 = vpack.c.bf16 %v119_v26, %v118_v25  ;;  %v120_v28 = vld [vmem:[%s3852_s3 + $0x30] sm:$0xff]  ;;  %v121_v29 = vld [vmem:[%s3852_s3 + $0x38] sm:$0xff]  ;;  %v2291_v31 = vld [vmem:[%s3853_s4] ss:$0 sm:$0xff] }
   0xb   :  { %2906 = vmatpush3.bf16.msra.mxu1 %v2903_v9  ;;  %v2927_v30 = vpack.c.bf16 %v121_v29, %v120_v28  ;;  %v385_v37 = vld [vmem:[%s3852_s3 + $0xc0] sm:$0xff]  ;;  %v386_v38 = vld [vmem:[%s3852_s3 + $0xc8] sm:$0xff]  ;;  %v387_v42 = vld [vmem:[%s3852_s3 + $0xd0] sm:$0xff] }
   0xc   :  { %2908 = vmatprep.subr.bf16.mxu1 %v2907_v13  ;;  %v2935_v41 = vpack.c.bf16 %v386_v38, %v385_v37  ;;  %v388_v43 = vld [vmem:[%s3852_s3 + $0xd8] sm:$0xff]  ;;  %v389_v45 = vld [vmem:[%s3852_s3 + $0xe0] sm:$0xff]  ;;  %v390_v46 = vld [vmem:[%s3852_s3 + $0xe8] sm:$0xff] }
   0xd   :  { %v2939_v44 = vpack.c.bf16 %v388_v43, %v387_v42  ;;  %v2943_v47 = vpack.c.bf16 %v390_v46, %v389_v45  ;;  %v391_v48 = vld [vmem:[%s3852_s3 + $0xf0] sm:$0xff]  ;;  %v392_v49 = vld [vmem:[%s3852_s3 + $0xf8] sm:$0xff]  ;;  %v377_v51 = vld [vmem:[%s3852_s3 + $0x80] sm:$0xff] }
   0xe   :  { %v2947_v50 = vpack.c.bf16 %v392_v49, %v391_v48  ;;  %v378_v52 = vld [vmem:[%s3852_s3 + $0x88] sm:$0xff]  ;;  %v379_v54 = vld [vmem:[%s3852_s3 + $0x90] sm:$0xff]  ;;  %v380_v55 = vld [vmem:[%s3852_s3 + $0x98] sm:$0xff] }
   0xf   :  { %2910 = vmatpush3.bf16.msra.mxu1 %v2907_v13  ;;  %v2951_v53 = vpack.c.bf16 %v378_v52, %v377_v51  ;;  %v2955_v58 = vpack.c.bf16 %v380_v55, %v379_v54  ;;  %v381_v59 = vld [vmem:[%s3852_s3 + $0xa0] sm:$0xff]  ;;  %v382_v60 = vld [vmem:[%s3852_s3 + $0xa8] sm:$0xff]  ;;  %v383_v62 = vld [vmem:[%s3852_s3 + $0xb0] sm:$0xff] }
  0x10   :  { %2912 = vmatprep.subr.bf16.mxu1 %v2911_v16  ;;  %v2959_v61 = vpack.c.bf16 %v382_v60, %v381_v59  ;;  %v384_v63 = vld [vmem:[%s3852_s3 + $0xb8] sm:$0xff]  ;;  %v648_v3 = vld [vmem:[%s3852_s3 + $0x148] sm:$0xff]  ;;  %v649_v4 = vld [vmem:[%s3852_s3 + $0x150] sm:$0xff] }
  0x11   :  { %v650_v6 = vld [vmem:[%s3852_s3 + $0x158] sm:$0xff]  ;;  %v651_v8 = vld [vmem:[%s3852_s3 + $0x160] sm:$0xff]  ;;  %v652_v9 = vld [vmem:[%s3852_s3 + $0x168] sm:$0xff] }
  0x12   :  { %v2975_v7 = vpack.c.bf16 %v650_v6, %v649_v4  ;;  %v2979_v10 = vpack.c.bf16 %v652_v9, %v651_v8  ;;  %v653_v11 = vld [vmem:[%s3852_s3 + $0x170] sm:$0xff]  ;;  %v654_v13 = vld [vmem:[%s3852_s3 + $0x178] sm:$0xff]  ;;  %v2298_v15 = vld [vmem:[%s3853_s4 + $0x1] ss:$0 sm:$0xff] }
  0x13   :  { %2914 = vmatpush3.bf16.msra.mxu1 %v2911_v16  ;;  %v2983_v14 = vpack.c.bf16 %v654_v13, %v653_v11  ;;  %v641_v26 = vld [vmem:[%s3852_s3 + $0x110] sm:$0xff]  ;;  %v2305_v37 = vld [vmem:[%s3853_s4 + $0x2] ss:$0 sm:$0xff]  ;;  %v912_v49 = vld [vmem:[%s3852_s3 + $0x1d8] sm:$0xff] }
  0x14   :  { %2916 = vmatprep.subr.bf16.mxu1 %v2915_v19  ;;  %v909_v43 = vld [vmem:[%s3852_s3 + $0x1c0] sm:$0xff]  ;;  %v911_v48 = vld [vmem:[%s3852_s3 + $0x1d0] sm:$0xff]  ;;  %v914_v52 = vld [vmem:[%s3852_s3 + $0x1e8] sm:$0xff] }
  0x15   :  { %v913_v51 = vld [vmem:[%s3852_s3 + $0x1e0] sm:$0xff]  ;;  %v915_v54 = vld [vmem:[%s3852_s3 + $0x1f0] sm:$0xff]  ;;  %v916_v55 = vld [vmem:[%s3852_s3 + $0x1f8] sm:$0xff] }
  0x16   :  { %v903_v60 = vld [vmem:[%s3852_s3 + $0x190] sm:$0xff]  ;;  %v908_v6 = vld [vmem:[%s3852_s3 + $0x1b8] sm:$0xff]  ;;  %v2312_v8 = vld [vmem:[%s3853_s4 + $0x3] ss:$0 sm:$0xff] }
  0xdb   :  { %v2541_v22 = vpop.f32.mrb[0].mxu0 }
  0xdc   :  { %v105_v23 = vpop.f32.mrb[1].mxu0 }
  0xdd   :  { %2558 = vmatprep.mubr.msk.f32.mxu1 %vm130_vm1, %v105_v23  ;;  %v639_v23 = vld [vmem:[%s3852_s3 + $0x100] sm:$0xff] }
  0xde   :  { %2559 = vmatmul.mubr.msk.f32.vlgmr.msra.gmra.mrb[0].mxu1 %vm130_vm1, %v2541_v22 }
  0xdf   :  { %2918 = vmatpush3.bf16.msra.mxu1 %v2915_v19  ;;  %2577 = vmatprep.mubr.msk.f32.mxu1 %vm130_vm1, %v30_v0  ;;  %v2963_v0 = vpack.c.bf16 %v384_v63, %v383_v62 }
  0xe0   :  { %2920 = vmatprep.subr.bf16.mxu1 %v2919_v24 }
  0xe3   :  { %2922 = vmatpush3.bf16.msra.mxu1 %v2919_v24  ;;  %v640_v24 = vld [vmem:[%s3852_s3 + $0x108] sm:$0xff] }
  0xe4   :  { %2924 = vmatprep.subr.bf16.mxu1 %v2923_v27  ;;  %v2987_v25 = vpack.c.bf16 %v640_v24, %v639_v23  ;;  %v1175_v23 = vld [vmem:[%s3852_s3 + $0x260] sm:$0xff]  ;;  %v1176_v24 = vld [vmem:[%s3852_s3 + $0x268] sm:$0xff] }
  0xe7   :  { %2926 = vmatpush3.bf16.msra.mxu1 %v2923_v27  ;;  %v642_v27 = vld [vmem:[%s3852_s3 + $0x118] sm:$0xff] }
  0xe8   :  { %2928 = vmatprep.subr.bf16.mxu1 %v2927_v30 }
  0xeb   :  { %2930 = vmatpush3.bf16.msra.mxu1 %v2927_v30  ;;  %v2991_v30 = vpack.c.bf16 %v642_v27, %v641_v26  ;;  %v1177_v26 = vld [vmem:[%s3852_s3 + $0x270] sm:$0xff]  ;;  %v1178_v27 = vld [vmem:[%s3852_s3 + $0x278] sm:$0xff] }
  0xee   :  { %2578 = vmatmul.mubr.msk.f32.vlgmr.msra.gmra.mrb[0].mxu1 %vm130_vm1, %v31_v1  ;;  %v647_v1 = vld [vmem:[%s3852_s3 + $0x140] sm:$0xff] }
  0xef   :  { %v2971_v5 = vpack.c.bf16 %v648_v3, %v647_v1  ;;  %v905_v1 = vld [vmem:[%s3852_s3 + $0x1a0] sm:$0xff]  ;;  %v906_v3 = vld [vmem:[%s3852_s3 + $0x1a8] sm:$0xff] }
  0xf0   :  { %v3031_v4 = vpack.c.bf16 %v906_v3, %v905_v1  ;;  %v1427_v3 = vld [vmem:[%s3852_s3 + $0x290] sm:$0xff] }
  0xf1   :  { %2972 = vmatprep.subr.bf16.mxu1 %v2971_v5 }
  0xf2   :  { %2974 = vmatpush3.bf16.msra.mxu1 %v2971_v5  ;;  %v907_v5 = vld [vmem:[%s3852_s3 + $0x1b0] sm:$0xff] }
  0xf3   :  { %2976 = vmatprep.subr.bf16.mxu1 %v2975_v7 }
  0xf6   :  { %2978 = vmatpush3.bf16.msra.mxu1 %v2975_v7  ;;  %v3035_v7 = vpack.c.bf16 %v908_v6, %v907_v5 }
  0xf7   :  { %2980 = vmatprep.subr.bf16.mxu1 %v2979_v10 }
  0xfa   :  { %2982 = vmatpush3.bf16.msra.mxu1 %v2979_v10 }
  0xfb   :  { %2984 = vmatprep.subr.bf16.mxu1 %v2983_v14 }
  0xfe   :  { %2986 = vmatpush3.bf16.msra.mxu1 %v2983_v14 }
  0xff   :  { %2988 = vmatprep.subr.bf16.mxu1 %v2987_v25 }
 0x1c1   :  { %v2579_v32 = vpop.f32.mrb[0].mxu1 }
 0x1c2   :  { %v299_v33 = vadd.f32 %v2579_v32, %v2291_v31  ;;  %v284_v34 = vpop.f32.mrb[1].mxu1  ;;  %v644_v32 = vld [vmem:[%s3852_s3 + $0x128] sm:$0xff] }
 0x1c3   :  { %v298_v35 = vadd.f32 %v2291_v31, %v284_v34  ;;  %v643_v31 = vld [vmem:[%s3852_s3 + $0x120] sm:$0xff]  ;;  %v645_v34 = vld [vmem:[%s3852_s3 + $0x130] sm:$0xff] }
 0x1c4   :  { %v301_v36 = vmax.f32 %v299_v33, 0.0  ;;  %v2995_v33 = vpack.c.bf16 %v644_v32, %v643_v31  ;;  %v1165_v32 = vld [vmem:[%s3852_s3 + $0x210] sm:$0xff] }
 0x1c5   :  { %v300_v39 = vmax.f32 %v298_v35, 0.0  ;;  %v646_v35 = vld [vmem:[%s3852_s3 + $0x138] sm:$0xff] }
 0x1c7   :  { %v2931_v40 = vpack.c.bf16 %v301_v36, %v300_v39 }
 0x1c9   :  { %2932 = vmatprep.subr.bf16.mxu0 %v2931_v40 }
 0x1ca   :  { %2934 = vmatpush3.bf16.msra.mxu0 %v2931_v40 }
 0x1cb   :  { %2936 = vmatprep.subr.bf16.mxu0 %v2935_v41 }
 0x1cd   :  { %2585 = vmatmul.mubr.msk.f32.vlgmr.msra.gmra.mrb[2].mxu0 %vm32_vm0, %v3317_v12 }
 0x1ce   :  { %2938 = vmatpush3.bf16.msra.mxu0 %v2935_v41 }
 0x1cf   :  { %2940 = vmatprep.subr.bf16.mxu0 %v2939_v44 }
 0x1d2   :  { %2942 = vmatpush3.bf16.msra.mxu0 %v2939_v44  ;;  %v910_v44 = vld [vmem:[%s3852_s3 + $0x1c8] sm:$0xff] }
 0x1d3   :  { %2944 = vmatprep.subr.bf16.mxu0 %v2943_v47 }
 0x1d6   :  { %2946 = vmatpush3.bf16.msra.mxu0 %v2943_v47  ;;  %v3007_v47 = vpack.c.bf16 %v910_v44, %v909_v43  ;;  %v2319_v43 = vld [vmem:[%s3853_s4 + $0x4] ss:$0 sm:$0xff] }
 0x1d7   :  { %2948 = vmatprep.subr.bf16.mxu0 %v2947_v50 }
 0x1da   :  { %2950 = vmatpush3.bf16.msra.mxu0 %v2947_v50  ;;  %v3011_v50 = vpack.c.bf16 %v912_v49, %v911_v48  ;;  %v1433_v49 = vld [vmem:[%s3852_s3 + $0x2c0] sm:$0xff] }
 0x1db   :  { %2952 = vmatprep.subr.bf16.mxu0 %v2951_v53 }
 0x2a0   :  { %v2586_v56 = vpop.f32.mrb[2].mxu0 }
 0x2a1   :  { %v368_v57 = vpop.f32.mrb[3].mxu0 }
 0x2a2   :  { %2603 = vmatprep.mubr.msk.f32.mxu0 %vm130_vm1, %v368_v57  ;;  %v901_v57 = vld [vmem:[%s3852_s3 + $0x180] sm:$0xff] }
 0x2a3   :  { %2604 = vmatmul.mubr.msk.f32.vlgmr.msra.gmra.mrb[4].mxu0 %vm130_vm1, %v2586_v56  ;;  %v3019_v56 = vpack.c.bf16 %v916_v55, %v915_v54  ;;  %v1435_v54 = vld [vmem:[%s3852_s3 + $0x2d0] sm:$0xff]  ;;  %v1436_v55 = vld [vmem:[%s3852_s3 + $0x2d8] sm:$0xff] }
 0x2a4   :  { %2954 = vmatpush3.bf16.msra.mxu0 %v2951_v53  ;;  %2622 = vmatprep.mubr.msk.f32.mxu0 %vm130_vm1, %v300_v39  ;;  %v3015_v53 = vpack.c.bf16 %v914_v52, %v913_v51 }
 0x2a5   :  { %2956 = vmatprep.subr.bf16.mxu0 %v2955_v58 }
 0x2a8   :  { %2958 = vmatpush3.bf16.msra.mxu0 %v2955_v58  ;;  %v902_v58 = vld [vmem:[%s3852_s3 + $0x188] sm:$0xff] }
 0x2a9   :  { %2960 = vmatprep.subr.bf16.mxu0 %v2959_v61  ;;  %v3023_v59 = vpack.c.bf16 %v902_v58, %v901_v57  ;;  %v1437_v57 = vld [vmem:[%s3852_s3 + $0x2e0] sm:$0xff]  ;;  %v1438_v58 = vld [vmem:[%s3852_s3 + $0x2e8] sm:$0xff] }
 0x2ac   :  { %2962 = vmatpush3.bf16.msra.mxu0 %v2959_v61  ;;  %v904_v61 = vld [vmem:[%s3852_s3 + $0x198] sm:$0xff] }
 0x2ad   :  { %2964 = vmatprep.subr.bf16.mxu0 %v2963_v0 }
 0x2b0   :  { %2966 = vmatpush3.bf16.msra.mxu0 %v2963_v0  ;;  %v3027_v0 = vpack.c.bf16 %v904_v61, %v903_v60  ;;  %v1439_v60 = vld [vmem:[%s3852_s3 + $0x2f0] sm:$0xff]  ;;  %v1440_v61 = vld [vmem:[%s3852_s3 + $0x2f8] sm:$0xff] }
 0x2b3   :  { %2623 = vmatmul.mubr.msk.f32.vlgmr.msra.gmra.mrb[4].mxu0 %vm130_vm1, %v301_v36  ;;  %v2999_v36 = vpack.c.bf16 %v646_v35, %v645_v34 }
 0x2b4   :  { %2629 = vmatprep.mubr.msk.f32.mxu0 %vm32_vm0, %v3292_v2 }
 0x386   :  { %v2624_v16 = vpop.f32.mrb[4].mxu0 }
 0x387   :  { %v561_v17 = vadd.f32 %v2624_v16, %v2298_v15  ;;  %v546_v18 = vpop.f32.mrb[5].mxu0  ;;  %v1172_v16 = vld [vmem:[%s3852_s3 + $0x248] sm:$0xff] }
 0x388   :  { %v560_v19 = vadd.f32 %v2298_v15, %v546_v18  ;;  %v1171_v15 = vld [vmem:[%s3852_s3 + $0x240] sm:$0xff] }
 0x389   :  { %v563_v20 = vmax.f32 %v561_v17, 0.0 }
 0x38a   :  { %v562_v21 = vmax.f32 %v560_v19, 0.0  ;;  %v3043_v19 = vpack.c.bf16 %v1172_v16, %v1171_v15  ;;  %v2326_v15 = vld [vmem:[%s3853_s4 + $0x5] ss:$0 sm:$0xff] }
 0x38c   :  { %v2967_v22 = vpack.c.bf16 %v563_v20, %v562_v21 }
 0x38e   :  { %2968 = vmatprep.subr.bf16.mxu0 %v2967_v22 }
 0x38f   :  { %2970 = vmatpush3.bf16.msra.mxu0 %v2967_v22 }
 0x392   :  { %2630 = vmatmul.mubr.msk.f32.vlgmr.msra.gmra.mrb[6].mxu0 %vm32_vm0, %v3317_v12 }
 0x393   :  { %2674 = vmatprep.mubr.msk.f32.mxu0 %vm32_vm0, %v3292_v2 }
 0x465   :  { %v2631_v28 = vpop.f32.mrb[6].mxu0 }
 0x466   :  { %v630_v29 = vpop.f32.mrb[7].mxu0 }
 0x467   :  { %2648 = vmatprep.mubr.msk.f32.mxu1 %vm130_vm1, %v630_v29  ;;  %v1163_v29 = vld [vmem:[%s3852_s3 + $0x200] sm:$0xff] }
 0x468   :  { %2649 = vmatmul.mubr.msk.f32.vlgmr.msra.gmra.mrb[2].mxu1 %vm130_vm1, %v2631_v28  ;;  %v3055_v28 = vpack.c.bf16 %v1178_v27, %v1177_v26  ;;  %v1698_v26 = vld [vmem:[%s3852_s3 + $0x358] sm:$0xff] }
 0x469   :  { %2990 = vmatpush3.bf16.msra.mxu1 %v2987_v25  ;;  %2667 = vmatprep.mubr.msk.f32.mxu1 %vm130_vm1, %v562_v21  ;;  %v1174_v21 = vld [vmem:[%s3852_s3 + $0x258] sm:$0xff]  ;;  %v3051_v25 = vpack.c.bf16 %v1176_v24, %v1175_v23 }
 0x46a   :  { %2992 = vmatprep.subr.bf16.mxu1 %v2991_v30 }
 0x46d   :  { %2994 = vmatpush3.bf16.msra.mxu1 %v2991_v30  ;;  %v1164_v30 = vld [vmem:[%s3852_s3 + $0x208] sm:$0xff] }
 0x46e   :  { %2996 = vmatprep.subr.bf16.mxu1 %v2995_v33  ;;  %v3059_v31 = vpack.c.bf16 %v1164_v30, %v1163_v29  ;;  %v1700_v29 = vld [vmem:[%s3852_s3 + $0x368] sm:$0xff] }
 0x471   :  { %2998 = vmatpush3.bf16.msra.mxu1 %v2995_v33  ;;  %v1166_v33 = vld [vmem:[%s3852_s3 + $0x218] sm:$0xff] }
 0x472   :  { %3000 = vmatprep.subr.bf16.mxu1 %v2999_v36 }
 0x475   :  { %3002 = vmatpush3.bf16.msra.mxu1 %v2999_v36  ;;  %v3063_v36 = vpack.c.bf16 %v1166_v33, %v1165_v32  ;;  %v1702_v32 = vld [vmem:[%s3852_s3 + $0x378] sm:$0xff] }
 0x478   :  { %2668 = vmatmul.mubr.msk.f32.vlgmr.msra.gmra.mrb[2].mxu1 %vm130_vm1, %v563_v20  ;;  %v1173_v20 = vld [vmem:[%s3852_s3 + $0x250] sm:$0xff] }
 0x479   :  { %2719 = vmatprep.mubr.msk.f32.mxu1 %vm32_vm0, %v3292_v2  ;;  %v3047_v22 = vpack.c.bf16 %v1174_v21, %v1173_v20  ;;  %v1695_v21 = vld [vmem:[%s3852_s3 + $0x340] sm:$0xff] }
 0x54b   :  { %v2669_v38 = vpop.f32.mrb[2].mxu1 }
 0x54c   :  { %v823_v39 = vadd.f32 %v2669_v38, %v2305_v37  ;;  %v808_v40 = vpop.f32.mrb[3].mxu1  ;;  %v1168_v38 = vld [vmem:[%s3852_s3 + $0x228] sm:$0xff] }
 0x54d   :  { %v822_v41 = vadd.f32 %v2305_v37, %v808_v40  ;;  %v1167_v37 = vld [vmem:[%s3852_s3 + $0x220] sm:$0xff]  ;;  %v1169_v40 = vld [vmem:[%s3852_s3 + $0x230] sm:$0xff] }
 0x54e   :  { %v825_v42 = vmax.f32 %v823_v39, 0.0  ;;  %v3067_v39 = vpack.c.bf16 %v1168_v38, %v1167_v37  ;;  %v1689_v37 = vld [vmem:[%s3852_s3 + $0x310] sm:$0xff]  ;;  %v1690_v38 = vld [vmem:[%s3852_s3 + $0x318] sm:$0xff] }
 0x54f   :  { %v824_v45 = vmax.f32 %v822_v41, 0.0  ;;  %v1170_v41 = vld [vmem:[%s3852_s3 + $0x238] sm:$0xff] }
 0x551   :  { %v3003_v46 = vpack.c.bf16 %v825_v42, %v824_v45 }
 0x553   :  { %3004 = vmatprep.subr.bf16.mxu0 %v3003_v46 }
 0x554   :  { %3006 = vmatpush3.bf16.msra.mxu0 %v3003_v46 }
 0x555   :  { %3008 = vmatprep.subr.bf16.mxu0 %v3007_v47 }
 0x557   :  { %2675 = vmatmul.mubr.msk.f32.vlgmr.msra.gmra.mrb[8].mxu0 %vm32_vm0, %v3317_v12 }
 0x558   :  { %3010 = vmatpush3.bf16.msra.mxu0 %v3007_v47 }
 0x559   :  { %3012 = vmatprep.subr.bf16.mxu0 %v3011_v50 }
 0x55c   :  { %3014 = vmatpush3.bf16.msra.mxu0 %v3011_v50  ;;  %v1434_v50 = vld [vmem:[%s3852_s3 + $0x2c8] sm:$0xff] }
 0x55d   :  { %3016 = vmatprep.subr.bf16.mxu0 %v3015_v53 }
 0x560   :  { %3018 = vmatpush3.bf16.msra.mxu0 %v3015_v53  ;;  %v3079_v53 = vpack.c.bf16 %v1434_v50, %v1433_v49 }
 0x561   :  { %3020 = vmatprep.subr.bf16.mxu0 %v3019_v56 }
 0x564   :  { %3022 = vmatpush3.bf16.msra.mxu0 %v3019_v56  ;;  %v3083_v56 = vpack.c.bf16 %v1436_v55, %v1435_v54  ;;  %v1957_v54 = vld [vmem:[%s3852_s3 + $0x3c0] sm:$0xff]  ;;  %v1958_v55 = vld [vmem:[%s3852_s3 + $0x3c8] sm:$0xff] }
 0x565   :  { %3024 = vmatprep.subr.bf16.mxu0 %v3023_v59 }
 0x62a   :  { %v2676_v62 = vpop.f32.mrb[8].mxu0 }
 0x62b   :  { %v892_v63 = vpop.f32.mrb[9].mxu0 }
 0x62c   :  { %2693 = vmatprep.mubr.msk.f32.mxu0 %vm130_vm1, %v892_v63  ;;  %v1425_v63 = vld [vmem:[%s3852_s3 + $0x280] sm:$0xff] }
 0x62d   :  { %2694 = vmatmul.mubr.msk.f32.vlgmr.msra.gmra.mrb[10].mxu0 %vm130_vm1, %v2676_v62  ;;  %v3091_v62 = vpack.c.bf16 %v1440_v61, %v1439_v60  ;;  %v1960_v60 = vld [vmem:[%s3852_s3 + $0x3d8] sm:$0xff] }
 0x62e   :  { %3026 = vmatpush3.bf16.msra.mxu0 %v3023_v59  ;;  %2712 = vmatprep.mubr.msk.f32.mxu0 %vm130_vm1, %v824_v45  ;;  %v3087_v59 = vpack.c.bf16 %v1438_v58, %v1437_v57  ;;  %v3151_v58 = vpack.c.bf16 %v1958_v55, %v1957_v54  ;;  %v2157_v54 = vld [vmem:[%s3855_s6] ss:$4 sm:$0x3] }
 0x62f   :  { %3028 = vmatprep.subr.bf16.mxu0 %v3027_v0 }
 0x632   :  { %3030 = vmatpush3.bf16.msra.mxu0 %v3027_v0  ;;  %v1426_v0 = vld [vmem:[%s3852_s3 + $0x288] sm:$0xff] }
 0x633   :  { %3032 = vmatprep.subr.bf16.mxu0 %v3031_v4  ;;  %v3095_v1 = vpack.c.bf16 %v1426_v0, %v1425_v63  ;;  %v1962_v63 = vld [vmem:[%s3852_s3 + $0x3e8] sm:$0xff] }
 0x636   :  { %3034 = vmatpush3.bf16.msra.mxu0 %v3031_v4  ;;  %v1428_v4 = vld [vmem:[%s3852_s3 + $0x298] sm:$0xff] }
 0x637   :  { %3036 = vmatprep.subr.bf16.mxu0 %v3035_v7 }
 0x63a   :  { %3038 = vmatpush3.bf16.msra.mxu0 %v3035_v7  ;;  %v3099_v7 = vpack.c.bf16 %v1428_v4, %v1427_v3  ;;  %v1964_v3 = vld [vmem:[%s3852_s3 + $0x3f8] sm:$0xff] }
 0x63d   :  { %2713 = vmatmul.mubr.msk.f32.vlgmr.msra.gmra.mrb[10].mxu0 %vm130_vm1, %v825_v42  ;;  %v3071_v42 = vpack.c.bf16 %v1170_v41, %v1169_v40  ;;  %v3135_v41 = vpack.c.bf16 %v1690_v38, %v1689_v37  ;;  %v2156_v37 = vld [vmem:[%s3854_s5 + $0x78] sm:$0xff]  ;;  %v2153_v38 = vld [vmem:[%s3854_s5 + $0x60] sm:$0xff] }
 0x63e   :  { %2764 = vmatprep.mubr.msk.f32.mxu0 %vm32_vm0, %v3292_v2 }
 0x710   :  { %v2714_v9 = vpop.f32.mrb[10].mxu0 }
 0x711   :  { %v1085_v10 = vadd.f32 %v2714_v9, %v2312_v8  ;;  %v1070_v11 = vpop.f32.mrb[11].mxu0  ;;  %v1430_v9 = vld [vmem:[%s3852_s3 + $0x2a8] sm:$0xff] }
 0x712   :  { %v1084_v13 = vadd.f32 %v2312_v8, %v1070_v11  ;;  %v1429_v8 = vld [vmem:[%s3852_s3 + $0x2a0] sm:$0xff]  ;;  %v1431_v11 = vld [vmem:[%s3852_s3 + $0x2b0] sm:$0xff] }
 0x713   :  { %v1087_v14 = vmax.f32 %v1085_v10, 0.0  ;;  %v3103_v10 = vpack.c.bf16 %v1430_v9, %v1429_v8  ;;  %v2144_v8 = vld [vmem:[%s3854_s5 + $0x18] sm:$0xff]  ;;  %v2141_v9 = vld [vmem:[%s3854_s5] sm:$0xff] }
 0x714   :  { %v1086_v17 = vmax.f32 %v1084_v13, 0.0  ;;  %v1432_v13 = vld [vmem:[%s3852_s3 + $0x2b8] sm:$0xff] }
 0x716   :  { %v3039_v18 = vpack.c.bf16 %v1087_v14, %v1086_v17 }
 0x718   :  { %3040 = vmatprep.subr.bf16.mxu1 %v3039_v18 }
 0x719   :  { %3042 = vmatpush3.bf16.msra.mxu1 %v3039_v18 }
 0x71a   :  { %3044 = vmatprep.subr.bf16.mxu1 %v3043_v19 }
 0x71c   :  { %2720 = vmatmul.mubr.msk.f32.vlgmr.msra.gmra.mrb[4].mxu1 %vm32_vm0, %v3317_v12 }
 0x71d   :  { %3046 = vmatpush3.bf16.msra.mxu1 %v3043_v19 }
 0x71e   :  { %3048 = vmatprep.subr.bf16.mxu1 %v3047_v22 }
 0x721   :  { %3050 = vmatpush3.bf16.msra.mxu1 %v3047_v22  ;;  %v1696_v22 = vld [vmem:[%s3852_s3 + $0x348] sm:$0xff] }
 0x722   :  { %3052 = vmatprep.subr.bf16.mxu1 %v3051_v25 }
 0x725   :  { %3054 = vmatpush3.bf16.msra.mxu1 %v3051_v25  ;;  %v1697_v25 = vld [vmem:[%s3852_s3 + $0x350] sm:$0xff] }
 0x726   :  { %3056 = vmatprep.subr.bf16.mxu1 %v3055_v28  ;;  %v3119_v27 = vpack.c.bf16 %v1698_v26, %v1697_v25  ;;  %v2148_v25 = vld [vmem:[%s3854_s5 + $0x38] sm:$0xff] }
 0x729   :  { %3058 = vmatpush3.bf16.msra.mxu1 %v3055_v28  ;;  %v1699_v28 = vld [vmem:[%s3852_s3 + $0x360] sm:$0xff] }
 0x72a   :  { %3060 = vmatprep.subr.bf16.mxu1 %v3059_v31  ;;  %v3123_v30 = vpack.c.bf16 %v1700_v29, %v1699_v28  ;;  %v2147_v28 = vld [vmem:[%s3854_s5 + $0x30] sm:$0xff] }
 0x7ef   :  { %v2721_v34 = vpop.f32.mrb[4].mxu1 }
 0x7f0   :  { %v1154_v35 = vpop.f32.mrb[5].mxu1 }
 0x7f1   :  { %2738 = vmatprep.mubr.msk.f32.mxu1 %vm130_vm1, %v1154_v35  ;;  %v1688_v35 = vld [vmem:[%s3852_s3 + $0x308] sm:$0xff] }
 0x7f2   :  { %2739 = vmatmul.mubr.msk.f32.vlgmr.msra.gmra.mrb[6].mxu1 %vm130_vm1, %v2721_v34  ;;  %v1687_v34 = vld [vmem:[%s3852_s3 + $0x300] sm:$0xff] }
 0x7f3   :  { %3062 = vmatpush3.bf16.msra.mxu1 %v3059_v31  ;;  %2757 = vmatprep.mubr.msk.f32.mxu1 %vm130_vm1, %v1086_v17  ;;  %v1701_v31 = vld [vmem:[%s3852_s3 + $0x370] sm:$0xff] }
 0x7f4   :  { %3064 = vmatprep.subr.bf16.mxu1 %v3063_v36  ;;  %v3127_v33 = vpack.c.bf16 %v1702_v32, %v1701_v31  ;;  %v2152_v31 = vld [vmem:[%s3854_s5 + $0x58] sm:$0xff] }
 0x7f7   :  { %3066 = vmatpush3.bf16.msra.mxu1 %v3063_v36  ;;  %v3131_v36 = vpack.c.bf16 %v1688_v35, %v1687_v34  ;;  %v2151_v34 = vld [vmem:[%s3854_s5 + $0x50] sm:$0xff] }
 0x7f8   :  { %3068 = vmatprep.subr.bf16.mxu1 %v3067_v39 }
 0x7fb   :  { %3070 = vmatpush3.bf16.msra.mxu1 %v3067_v39 }
 0x7fc   :  { %3072 = vmatprep.subr.bf16.mxu1 %v3071_v42 }
 0x7ff   :  { %3074 = vmatpush3.bf16.msra.mxu1 %v3071_v42  ;;  %v1691_v42 = vld [vmem:[%s3852_s3 + $0x320] sm:$0xff] }
 0x802   :  { %2758 = vmatmul.mubr.msk.f32.vlgmr.msra.gmra.mrb[6].mxu1 %vm130_vm1, %v1087_v14  ;;  %v3107_v14 = vpack.c.bf16 %v1432_v13, %v1431_v11  ;;  %v2143_v11 = vld [vmem:[%s3854_s5 + $0x10] sm:$0xff] }
 0x803   :  { %2809 = vmatprep.mubr.msk.f32.mxu1 %vm32_vm0, %v3292_v2  ;;  %v3185_v13 = vpack.c.bf16 %v2143_v11, %v2141_v9 }
 0x8d5   :  { %v2759_v44 = vpop.f32.mrb[6].mxu1 }
 0x8d6   :  { %v1347_v45 = vadd.f32 %v2759_v44, %v2319_v43  ;;  %v1332_v46 = vpop.f32.mrb[7].mxu1 }
 0x8d7   :  { %v1346_v47 = vadd.f32 %v2319_v43, %v1332_v46  ;;  %v1692_v43 = vld [vmem:[%s3852_s3 + $0x328] sm:$0xff]  ;;  %v1694_v46 = vld [vmem:[%s3852_s3 + $0x338] sm:$0xff] }
 0x8d8   :  { %v1349_v48 = vmax.f32 %v1347_v45, 0.0  ;;  %v3139_v44 = vpack.c.bf16 %v1692_v43, %v1691_v42  ;;  %v1693_v45 = vld [vmem:[%s3852_s3 + $0x330] sm:$0xff]  ;;  %v2340_v43 = vld [vmem:[%s3853_s4 + $0x7] ss:$0 sm:$0xff] }
 0x8d9   :  { %v1348_v51 = vmax.f32 %v1346_v47, 0.0  ;;  %v3143_v47 = vpack.c.bf16 %v1694_v46, %v1693_v45 }
 0x8db   :  { %v3075_v52 = vpack.c.bf16 %v1349_v48, %v1348_v51 }
 0x8dd   :  { %3076 = vmatprep.subr.bf16.mxu0 %v3075_v52 }
 0x8de   :  { %3078 = vmatpush3.bf16.msra.mxu0 %v3075_v52 }
 0x8df   :  { %3080 = vmatprep.subr.bf16.mxu0 %v3079_v53 }
 0x8e1   :  { %2765 = vmatmul.mubr.msk.f32.vlgmr.msra.gmra.mrb[12].mxu0 %vm32_vm0, %v3317_v12 }
 0x8e2   :  { %3082 = vmatpush3.bf16.msra.mxu0 %v3079_v53 }
 0x8e3   :  { %3084 = vmatprep.subr.bf16.mxu0 %v3083_v56 }
 0x8e6   :  { %3086 = vmatpush3.bf16.msra.mxu0 %v3083_v56 }
 0x8e7   :  { %3088 = vmatprep.subr.bf16.mxu0 %v3087_v59 }
 0x8ea   :  { %3090 = vmatpush3.bf16.msra.mxu0 %v3087_v59  ;;  %v1959_v59 = vld [vmem:[%s3852_s3 + $0x3d0] sm:$0xff] }
 0x8eb   :  { %3092 = vmatprep.subr.bf16.mxu0 %v3091_v62  ;;  %v3155_v61 = vpack.c.bf16 %v1960_v60, %v1959_v59 }
 0x8ee   :  { %3094 = vmatpush3.bf16.msra.mxu0 %v3091_v62  ;;  %v1961_v62 = vld [vmem:[%s3852_s3 + $0x3e0] sm:$0xff] }
 0x8ef   :  { %3096 = vmatprep.subr.bf16.mxu0 %v3095_v1  ;;  %v3159_v0 = vpack.c.bf16 %v1962_v63, %v1961_v62 }
 0x9b4   :  { %v2766_v5 = vpop.f32.mrb[12].mxu0 }
 0x9b5   :  { %v1416_v6 = vpop.f32.mrb[13].mxu0 }
 0x9b6   :  { %2783 = vmatprep.mubr.msk.f32.mxu0 %vm130_vm1, %v1416_v6 }
 0x9b7   :  { %2784 = vmatmul.mubr.msk.f32.vlgmr.msra.gmra.mrb[14].mxu0 %vm130_vm1, %v2766_v5  ;;  %v1950_v5 = vld [vmem:[%s3852_s3 + $0x388] sm:$0xff] }
 0x9b8   :  { %3098 = vmatpush3.bf16.msra.mxu0 %v3095_v1  ;;  %2802 = vmatprep.mubr.msk.f32.mxu0 %vm130_vm1, %v1348_v51  ;;  %v1963_v1 = vld [vmem:[%s3852_s3 + $0x3f0] sm:$0xff] }
 0x9b9   :  { %3100 = vmatprep.subr.bf16.mxu0 %v3099_v7  ;;  %v3163_v4 = vpack.c.bf16 %v1964_v3, %v1963_v1 }
 0x9bc   :  { %3102 = vmatpush3.bf16.msra.mxu0 %v3099_v7  ;;  %v2142_v7 = vld [vmem:[%s3854_s5 + $0x8] sm:$0xff] }
 0x9bd   :  { %3104 = vmatprep.subr.bf16.mxu0 %v3103_v10 }
 0x9c0   :  { %3106 = vmatpush3.bf16.msra.mxu0 %v3103_v10  ;;  %v3183_v10 = vpack.c.bf16 %v2144_v8, %v2142_v7  ;;  %v2266_v8 = vld [vmem:[%s3855_s6 + $0x2] sm:$0x1] }
 0x9c1   :  { %3108 = vmatprep.subr.bf16.mxu0 %v3107_v14 }
 0x9c4   :  { %3110 = vmatpush3.bf16.msra.mxu0 %v3107_v14  ;;  %v1951_v14 = vld [vmem:[%s3852_s3 + $0x390] sm:$0xff] }
 0x9c7   :  { %2803 = vmatmul.mubr.msk.f32.vlgmr.msra.gmra.mrb[14].mxu0 %vm130_vm1, %v1349_v48  ;;  %v2333_v48 = vld [vmem:[%s3853_s4 + $0x6] ss:$0 sm:$0xff] }
 0x9c8   :  { %2854 = vmatprep.mubr.msk.f32.mxu0 %vm32_vm0, %v3292_v2  ;;  %v3115_v2 = vpack.c.bf16 %v1696_v22, %v1695_v21  ;;  %v1955_v22 = vld [vmem:[%s3852_s3 + $0x3b0] sm:$0xff] }
 0xa9a   :  { %v2804_v16 = vpop.f32.mrb[14].mxu0 }
 0xa9b   :  { %v1609_v17 = vadd.f32 %v2804_v16, %v2326_v15  ;;  %v1594_v18 = vpop.f32.mrb[15].mxu0 }
 0xa9c   :  { %v1608_v19 = vadd.f32 %v2326_v15, %v1594_v18  ;;  %v1952_v15 = vld [vmem:[%s3852_s3 + $0x398] sm:$0xff] }
 0xa9d   :  { %v1611_v20 = vmax.f32 %v1609_v17, 0.0  ;;  %v3171_v18 = vpack.c.bf16 %v1952_v15, %v1951_v14 }
 0xa9e   :  { %v1610_v23 = vmax.f32 %v1608_v19, 0.0  ;;  %v1953_v19 = vld [vmem:[%s3852_s3 + $0x3a0] sm:$0xff] }
 0xaa0   :  { %v3111_v24 = vpack.c.bf16 %v1611_v20, %v1610_v23 }
 0xaa2   :  { %3112 = vmatprep.subr.bf16.mxu1 %v3111_v24 }
 0xaa3   :  { %3114 = vmatpush3.bf16.msra.mxu1 %v3111_v24 }
 0xaa4   :  { %3116 = vmatprep.subr.bf16.mxu1 %v3115_v2 }
 0xaa6   :  { %2810 = vmatmul.mubr.msk.f32.vlgmr.msra.gmra.mrb[8].mxu1 %vm32_vm0, %v3317_v12 }
 0xaa7   :  { %3118 = vmatpush3.bf16.msra.mxu1 %v3115_v2  ;;  %v2146_v2 = vld [vmem:[%s3854_s5 + $0x28] sm:$0xff] }
 0xaa8   :  { %3120 = vmatprep.subr.bf16.mxu1 %v3119_v27  ;;  %v3187_v26 = vpack.c.bf16 %v2148_v25, %v2146_v2 }
 0xaab   :  { %3122 = vmatpush3.bf16.msra.mxu1 %v3119_v27  ;;  %v2145_v27 = vld [vmem:[%s3854_s5 + $0x20] sm:$0xff] }
 0xaac   :  { %3124 = vmatprep.subr.bf16.mxu1 %v3123_v30  ;;  %v3189_v29 = vpack.c.bf16 %v2147_v28, %v2145_v27 }
 0xaaf   :  { %3126 = vmatpush3.bf16.msra.mxu1 %v3123_v30  ;;  %v2150_v30 = vld [vmem:[%s3854_s5 + $0x48] sm:$0xff] }
 0xab0   :  { %3128 = vmatprep.subr.bf16.mxu1 %v3127_v33  ;;  %v3191_v32 = vpack.c.bf16 %v2152_v31, %v2150_v30 }
 0xab3   :  { %3130 = vmatpush3.bf16.msra.mxu1 %v3127_v33  ;;  %v2149_v33 = vld [vmem:[%s3854_s5 + $0x40] sm:$0xff] }
 0xab4   :  { %3132 = vmatprep.subr.bf16.mxu1 %v3131_v36  ;;  %v3193_v35 = vpack.c.bf16 %v2151_v34, %v2149_v33 }
 0xb79   :  { %v2811_v39 = vpop.f32.mrb[8].mxu1 }
 0xb7a   :  { %v1678_v40 = vpop.f32.mrb[9].mxu1 }
 0xb7b   :  { %2828 = vmatprep.mubr.msk.f32.mxu1 %vm130_vm1, %v1678_v40  ;;  %v2155_v40 = vld [vmem:[%s3854_s5 + $0x70] sm:$0xff] }
 0xb7c   :  { %2829 = vmatmul.mubr.msk.f32.vlgmr.msra.gmra.mrb[10].mxu1 %vm130_vm1, %v2811_v39  ;;  %v3197_v42 = vpack.c.bf16 %v2155_v40, %v2153_v38 }
 0xb7d   :  { %3134 = vmatpush3.bf16.msra.mxu1 %v3131_v36  ;;  %2847 = vmatprep.mubr.msk.f32.mxu1 %vm130_vm1, %v1610_v23  ;;  %v1956_v23 = vld [vmem:[%s3852_s3 + $0x3b8] sm:$0xff]  ;;  %v2154_v36 = vld [vmem:[%s3854_s5 + $0x68] sm:$0xff] }
 0xb7e   :  { %3136 = vmatprep.subr.bf16.mxu1 %v3135_v41  ;;  %v3179_v24 = vpack.c.bf16 %v1956_v23, %v1955_v22  ;;  %v3195_v39 = vpack.c.bf16 %v2156_v37, %v2154_v36 }
 0xb81   :  { %3138 = vmatpush3.bf16.msra.mxu1 %v3135_v41  ;;  %v3241_v41 = vmov 0.0  }
 0xb82   :  { %3140 = vmatprep.subr.bf16.mxu1 %v3139_v44 }
 0xb85   :  { %3142 = vmatpush3.bf16.msra.mxu1 %v3139_v44 }
 0xb86   :  { %3144 = vmatprep.subr.bf16.mxu1 %v3143_v47 }
 0xb89   :  { %3146 = vmatpush3.bf16.msra.mxu1 %v3143_v47 }
 0xb8a   :  { %3184 = vmatprep.subr.bf16.mxu1 %v3183_v10 }
 0xb8c   :  { %2848 = vmatmul.mubr.msk.f32.vlgmr.msra.gmra.mrb[10].mxu1 %vm130_vm1, %v1611_v20  ;;  %v1954_v20 = vld [vmem:[%s3852_s3 + $0x3a8] sm:$0xff] }
 0xb8d   :  { %3186 = vmatpush1.bf16.msra.mxu1 %v3185_v13  ;;  %v3175_v21 = vpack.c.bf16 %v1954_v20, %v1953_v19  ;;  %2236 = vmatprep.mubr.f32.mxu1 %v3241_v41 }
 0xb8e   :  { %3188 = vmatprep.subr.bf16.mxu1 %v3187_v26 }
 0xb91   :  { %3190 = vmatpush1.bf16.msra.mxu1 %v3189_v29 }
 0xb92   :  { %3192 = vmatprep.subr.bf16.mxu1 %v3191_v32 }
 0xb95   :  { %3194 = vmatpush1.bf16.msra.mxu1 %v3193_v35 }
 0xb96   :  { %3196 = vmatprep.subr.bf16.mxu1 %v3195_v39 }
 0xb99   :  { %3198 = vmatpush1.bf16.msra.mxu1 %v3197_v42 }
 0xc5f   :  { %v2849_v49 = vpop.f32.mrb[10].mxu1 }
 0xc60   :  { %v3714_v50 = vadd.f32 %v2849_v49, %v2333_v48  ;;  %v1856_v51 = vpop.f32.mrb[11].mxu1 }
 0xc61   :  { %v1870_v52 = vadd.f32 %v2333_v48, %v1856_v51  ;;  %v2159_v51 = vlaneseq }
 0xc62   :  { %v1873_v53 = vmax.f32 %v3714_v50, 0.0 }
 0xc63   :  { %v1872_v56 = vmax.f32 %v1870_v52, 0.0  ;;  %v2160_v52 = vshrl.u32 %v2159_v51, 7 }
 0xc65   :  { %v3147_v57 = vpack.c.bf16 %v1873_v53, %v1872_v56  ;;  %v2165_v55 = vsub.s32 1, %v2160_v52 }
 0xc67   :  { %3148 = vmatprep.subr.bf16.mxu0 %v3147_v57 }
 0xc68   :  { %3150 = vmatpush3.bf16.msra.mxu0 %v3147_v57  ;;  %v2166_v57 = vrot.slane %v2157_v54, %v2165_v55 }
 0xc69   :  { %3152 = vmatprep.subr.bf16.mxu0 %v3151_v58 }
 0xc6b   :  { %2855 = vmatmul.mubr.msk.f32.vlgmr.msra.gmra.mrb[16].mxu0 %vm32_vm0, %v3317_v12  ;;  %v1949_v12 = vld [vmem:[%s3852_s3 + $0x380] sm:$0xff]  ;;  %s3242_s3 = smov [#allocation4]  }
 0xc6c   :  { %3154 = vmatpush3.bf16.msra.mxu0 %v3151_v58  ;;  %v3167_v6 = vpack.c.bf16 %v1950_v5, %v1949_v12  ;;  %v2342_v58 = vld [vmem:[%s3855_s6 + $0x1] ss:$4 sm:$0x3]  ;;  %s2276_s17 = sshll.u32 %s3242_s3, 4  ;;  %s2277_s17 = int_to_ptr.vmem [resolvable:$true] %s2276_s17 }
 0xc6d   :  { %3156 = vmatprep.subr.bf16.mxu0 %v3155_v61  ;;  %s3217_s18 = scalar_lea.vmem %s2277_s17, 16  ;;  %s3221_s19 = scalar_lea.vmem %s2277_s17, 32 }
 0xc6e   :  { %p3218_p0 = scmp.ne.s32.totalorder %s2277_s17, %s3217_s18  ;;  %p3222_p1 = scmp.lt.s32.totalorder %s2277_s17, %s2277_s17 }
 0xc6f   :  { %p3223_p2 = scmp.lt.s32.totalorder %s3221_s19, %s3217_s18 }
 0xc70   :  { %3158 = vmatpush3.bf16.msra.mxu0 %v3155_v61 }
 0xc71   :  { %3160 = vmatprep.subr.bf16.mxu0 %v3159_v0  ;;  %p3224_p3 = por %p3223_p2, %p3222_p1 }
 0xc73   :  { %p3225_p4 = pnand %p3224_p3, %p3218_p0 }
 0xc74   :  { %3162 = vmatpush3.bf16.msra.mxu0 %v3159_v0  ;;  %v2255_v0 = vrot.slane %v2342_v58, %v2165_v55 }
 0xc75   :  { %3164 = vmatprep.subr.bf16.mxu0 %v3163_v4 }
 0xc78   :  { %3166 = vmatpush3.bf16.msra.mxu0 %v3163_v4 }
 0xc79   :  { %3168 = vmatprep.subr.bf16.mxu0 %v3167_v6 }
 0xd3e   :  { %v2856_v16 = vpop.f32.mrb[16].mxu0 }
 0xd3f   :  { %v1940_v17 = vpop.f32.mrb[17].mxu0 }
 0xd40   :  { %2873 = vmatprep.mubr.msk.f32.mxu0 %vm130_vm1, %v1940_v17 }
 0xd41   :  { %2874 = vmatmul.mubr.msk.f32.vlgmr.msra.gmra.mrb[18].mxu0 %vm130_vm1, %v2856_v16 }
 0xd42   :  { %3170 = vmatpush3.bf16.msra.mxu0 %v3167_v6  ;;  %2892 = vmatprep.mubr.msk.f32.mxu0 %vm130_vm1, %v1872_v56 }
 0xd43   :  { %3172 = vmatprep.subr.bf16.mxu0 %v3171_v18 }
 0xd46   :  { %3174 = vmatpush3.bf16.msra.mxu0 %v3171_v18 }
 0xd47   :  { %3176 = vmatprep.subr.bf16.mxu0 %v3175_v21 }
 0xd4a   :  { %3178 = vmatpush3.bf16.msra.mxu0 %v3175_v21 }
 0xd4b   :  { %3180 = vmatprep.subr.bf16.mxu0 %v3179_v24 }
 0xd4e   :  { %3182 = vmatpush3.bf16.msra.mxu0 %v3179_v24 }
 0xd51   :  { %2893 = vmatmul.mubr.msk.f32.vlgmr.msra.gmra.mrb[18].mxu0 %vm130_vm1, %v1873_v53  ;;  %v2161_v53 = vsub.s32 0, %v2160_v52 }
 0xd53   :  { %v2162_v56 = vrot.slane %v2157_v54, %v2161_v53  ;;  %v2251_v62 = vrot.slane %v2342_v58, %v2161_v53 }
 0xe24   :  { %v2894_v44 = vpop.f32.mrb[18].mxu0 }
 0xe25   :  { %v2133_v45 = vadd.f32 %v2894_v44, %v2340_v43  ;;  %v2118_v46 = vpop.f32.mrb[19].mxu0 }
 0xe26   :  { %v2132_v47 = vadd.f32 %v2340_v43, %v2118_v46 }
 0xe27   :  { %v2135_v48 = vmax.f32 %v2133_v45, 0.0 }
 0xe28   :  { %v2134_v49 = vmax.f32 %v2132_v47, 0.0 }
 0xe29   :  { %2137 = vst.msk [vmem:[#allocation2 + $0x8] sm:$0xff] %vm130_vm1, %v2135_v48 }
 0xe2a   :  { %2136 = vst.msk [vmem:[#allocation2] sm:$0xff] %vm130_vm1, %v2134_v49 }
 0xe31   :  { %v2140_v50 = vld [vmem:[%s2139_s12] sm:$0x1] }
 0xe32   :  { %2341 = vmatmul.mubr.msk.f32.vlgmr.msra.gmra.mrb[12].mxu1 %vm130_vm1, %v2140_v50 }
 0xf05   :  { %v2238_v59 = vpop.f32.mrb[12].mxu1 }
 0xf06   :  { %v2239_v60 = vadd.f32 %v2238_v59, %v2162_v56  ;;  %v2240_v61 = vpop.f32.mrb[13].mxu1 }
 0xf07   :  { %v2241_v63 = vadd.f32 %v2240_v61, %v2166_v57 }
 0xf08   :  { %v2243_v1 = vmax.f32 %v2239_v60, 0.0 }
 0xf09   :  { %v2244_v3 = vmax.f32 %v2241_v63, 0.0 }
 0xf0a   :  { %v2258_v4 = vmul.f32 %v2251_v62, %v2243_v1 }
 0xf0b   :  { %v2259_v12 = vmul.f32 %v2255_v0, %v2244_v3 }
 0xf0c   :  { %v2261_v5 = vsel %vm2260_vm2, %v2258_v4, 0.0 }
 0xf0d   :  { %v2262_v6 = vsel %vm2260_vm2, %v2259_v12, 0.0 }
 0xf0e   :  { %v2263_v7 = vadd.f32 %v2262_v6, %v2261_v5 }
 0xf10   :  { %2264 = vadd.xlane.f32.xlu0 %v2263_v7 }
 0xf9d   :  { %v2265_v9 = vpop.xlane.xlu0 %2264 }
 0xf9e   :  { %v2267_v10 = vadd.f32 %v2266_v8, %v2265_v9 }
 0xfa0   :  { %2269 = vst.msk [vmem:[#allocation4] sm:$0x1] %vm2268_vm3, %v2267_v10 }
 0xfa1   :  { %3228 = shalt.err (!%p3225_p4)
}
 0xfa2   :  { %s3229_s22 = scalar_lea.hbm %s3856_s7, 16 }
 0xfa3   :  { %p3230_p5 = scmp.ne.s32.totalorder %s3856_s7, %s3229_s22  ;;  %p3233_p6 = scmp.lt.u32.totalorder %s3229_s22, %s3856_s7 }
 0xfa5   :  { %p3235_p7 = pnand %p3233_p6, %p3230_p5 }
 0xfa7   :  { %3238 = shalt.err (!%p3235_p7)
}
 0xfa8   :  { %2279 = dma.vmem_to_hbm [thread:$0]  %s2277_s17, 16, %s3856_s7, [#allocation5]  }
 0xfa9   :  { %3239 = dma.done.wait [#allocation5], 16  }
 0xfaa   :  { %3240 = vsyncadd [#allocation5], 4294967280 }
 0xfab   :  { %2283 = vsyncpa [#allocation5], 1 }

</bundles_post_ra>
